<compile_context>
chip_gen: v7x
topology: tpu7x:2x2x1
jax: 0.10.0
libtpu: 0.0.40
codegen_flags: <defaults>
</compile_context>

<pallas_src>
import jax
import jax.numpy as jnp
from jax import lax
from jax.experimental import pallas as pl
from jax.experimental.pallas import tpu as pltpu

N_ACTIONS = 100
cell = 5
regionnum = cell * cell
N_STATES = 3 * regionnum + 1  # 76
HIDDEN = 400

# Lane-aligned (128-multiple) padded dims; zero padding is baked into weights.
H_PAD = 512   # HIDDEN    400 -> 512
A_PAD = 128   # N_ACTIONS 100 -> 128

TILE_B_MAX = 2048  # rows per grid step (~4-5 MiB f32 working set incl. double
                   # buffers; set vmem_limit_bytes explicitly if raised further)


def _cdiv(a, b):
    return (a + b - 1) // b


def _round_up(x, m):
    return ((x + m - 1) // m) * m


def _net_kernel(x_ref, w1_ref, b1_ref, wo_ref, bo_ref, out_ref):
    # h = relu(x @ W1 + b1) ; out = h @ Wout + bout
    w1 = w1_ref[...]                                   # [76, H_PAD]  (f32 or bf16)
    wo = wo_ref[...]                                   # [H_PAD, A_PAD]
    x = x_ref[...].astype(w1.dtype)                    # [TB, 76]
    h = jnp.dot(x, w1, preferred_element_type=jnp.float32)      # [TB, H_PAD] f32
    h = jnp.maximum(h + b1_ref[...], 0.0)                        # bias + ReLU in f32
    o = jnp.dot(h.astype(wo.dtype), wo, preferred_element_type=jnp.float32)
    out_ref[...] = (o + bo_ref[...]).astype(out_ref.dtype)       # [TB, A_PAD]


def net_forward(x, params):
    """x: [B, N_STATES] f32.
    params = (w1 [N_STATES, H_PAD], b1 [1, H_PAD] f32,
              wo [H_PAD, A_PAD],  bo [1, A_PAD] f32)
    (weights may be f32 or bf16; padded rows/cols are exact zeros).
    Returns [B, N_ACTIONS] f32."""
    w1, b1, wo, bo = params
    B = x.shape[0]

    # --- Balanced batch tiling ---------------------------------------------
    num_tiles = max(1, _cdiv(B, TILE_B_MAX))
    if B > 16:
        # >=2 (and even) grid steps so v7x's two TensorCores both get work.
        num_tiles = max(num_tiles, 2)
        num_tiles = 2 * _cdiv(num_tiles, 2)
    tile_b = max(8, _round_up(_cdiv(B, num_tiles), 8))
    grid = (_cdiv(B, tile_b),)   # last block may be a remainder (clipped writes)

    flops = 2 * B * (N_STATES * HIDDEN + HIDDEN * N_ACTIONS)
    bytes_accessed = int(
        x.size * x.dtype.itemsize
        + w1.size * w1.dtype.itemsize + wo.size * wo.dtype.itemsize
        + b1.size * b1.dtype.itemsize + bo.size * bo.dtype.itemsize
        + B * A_PAD * 4
    )

    out_p = pl.pallas_call(
        _net_kernel,
        out_shape=jax.ShapeDtypeStruct((B, A_PAD), jnp.float32),
        grid_spec=pltpu.PrefetchScalarGridSpec(
            num_scalar_prefetch=0,
            grid=grid,
            in_specs=[
                pl.BlockSpec((tile_b, N_STATES), lambda i: (i, 0)),  # x (tiled, un-padded K)
                pl.BlockSpec((N_STATES, H_PAD), lambda i: (0, 0)),   # W1   (resident)
                pl.BlockSpec((1, H_PAD), lambda i: (0, 0)),          # b1   (resident)
                pl.BlockSpec((H_PAD, A_PAD), lambda i: (0, 0)),      # Wout (resident)
                pl.BlockSpec((1, A_PAD), lambda i: (0, 0)),          # bout (resident)
            ],
            out_specs=pl.BlockSpec((tile_b, A_PAD), lambda i: (i, 0)),
        ),
        compiler_params=pltpu.CompilerParams(
            dimension_semantics=("parallel",),   # shard batch over TCs on v7x
        ),
        cost_estimate=pl.CostEstimate(
            flops=flops, transcendentals=0, bytes_accessed=bytes_accessed
        ),
    )(x, w1, b1, wo, bo)

    # Slice away the 100->128 output padding (batch dim is already exact).
    return out_p[:, :N_ACTIONS]


def init_params(key, dtype=jnp.float32):
    """Deterministic init mirroring the PyTorch module:
    weights ~ Normal(0, 0.1) (explicit in __init__),
    biases ~ Uniform(-1/sqrt(fan_in), 1/sqrt(fan_in)) (PyTorch Linear default).
    Weights stored as [in_features, out_features] (W.T vs PyTorch), output
    dims zero-padded to 128 multiples, optionally cast to bf16 for the MXU.
    Biases stay f32 (bias add / ReLU run in f32)."""
    k1, k2, k3, k4 = jax.random.split(key, 4)

    w1_core = 0.1 * jax.random.normal(k1, (N_STATES, HIDDEN), dtype=jnp.float32)
    wo_core = 0.1 * jax.random.normal(k2, (HIDDEN, N_ACTIONS), dtype=jnp.float32)
    bound1 = 1.0 / float(N_STATES) ** 0.5
    boundo = 1.0 / float(HIDDEN) ** 0.5
    b1_core = jax.random.uniform(k3, (1, HIDDEN), jnp.float32, -bound1, bound1)
    bo_core = jax.random.uniform(k4, (1, N_ACTIONS), jnp.float32, -boundo, boundo)

    # Bake zero padding into the stored parameters (exact zeros, so the real
    # 100 output columns are identical to the unpadded math).
    w1 = jnp.zeros((N_STATES, H_PAD), dtype).at[:, :HIDDEN].set(w1_core.astype(dtype))
    b1 = jnp.zeros((1, H_PAD), jnp.float32).at[:, :HIDDEN].set(b1_core)
    wo = jnp.zeros((H_PAD, A_PAD), dtype).at[:HIDDEN, :N_ACTIONS].set(wo_core.astype(dtype))
    bo = jnp.zeros((1, A_PAD), jnp.float32).at[:, :N_ACTIONS].set(bo_core)

    # TODO(synk): fc2 (Linear(400, 400)) is defined in __init__ but never used
    # in forward(), so it is intentionally not materialized here.
    return w1, b1, wo, bo


if __name__ == "__main__":
    key = jax.random.PRNGKey(0)
    kx, kp = jax.random.split(key)

    # Small, deliberately awkward batch: exercises a 2-step grid (tile_b=24)
    # with a remainder last block.
    B = 37
    x = jax.random.normal(kx, (B, N_STATES), dtype=jnp.float32)

    # ---- f32 path ----------------------------------------------------------
    w1, b1, wo, bo = init_params(kp, jnp.float32)
    out = jax.block_until_ready(net_forward(x, (w1, b1, wo, bo)))
    assert out.shape == (B, N_ACTIONS)

    hp = lax.Precision.HIGHEST
    ref = (
        jnp.dot(
            jnp.maximum(jnp.dot(x, w1[:, :HIDDEN], precision=hp) + b1[:, :HIDDEN], 0.0),
            wo[:HIDDEN, :N_ACTIONS],
            precision=hp,
        )
        + bo[:, :N_ACTIONS]
    )
    # Tolerance covers possible multi-pass/bf16-pass MXU f32 emulation modes;
    # layout or weight bugs would produce O(1) errors.
    assert jnp.allclose(out, ref, atol=1e-2, rtol=1e-2)

    # ---- bf16-weight path (training / large-batch configuration) ----------
    w1b, b1b, wob, bob = init_params(kp, jnp.bfloat16)
    out_bf = jax.block_until_ready(net_forward(x, (w1b, b1b, wob, bob)))
    h_bf = jnp.maximum(
        jnp.dot(x.astype(jnp.bfloat16), w1b[:, :HIDDEN],
                preferred_element_type=jnp.float32) + b1b[:, :HIDDEN],
        0.0,
    )
    ref_bf = (
        jnp.dot(h_bf.astype(jnp.bfloat16), wob[:HIDDEN, :N_ACTIONS],
                preferred_element_type=jnp.float32)
        + bob[:, :N_ACTIONS]
    )
    assert out_bf.shape == (B, N_ACTIONS)
    assert jnp.allclose(out_bf, ref_bf, atol=2e-2, rtol=2e-2)

    print("KERNEL_OK")
</pallas_src>

<mosaic_0001>
module attributes {stable_mosaic.version = 11 : i64} {
  func.func @_net_kernel(%arg0: i32, %arg1: memref<24x76xf32, #tpu.memory_space<vmem>>, %arg2: memref<76x512xf32, #tpu.memory_space<vmem>>, %arg3: memref<1x512xf32, #tpu.memory_space<vmem>>, %arg4: memref<512x128xf32, #tpu.memory_space<vmem>>, %arg5: memref<1x128xf32, #tpu.memory_space<vmem>>, %arg6: memref<24x128xf32, #tpu.memory_space<vmem>>) attributes {dimension_semantics = [#tpu.dimension_semantics<parallel>], iteration_bounds = array<i64: 2>, scalar_prefetch = 0 : i64, scratch_operands = 0 : i64, tpu.core_type = #tpu.core_type<tc>, window_params = [{transform_indices = @transform_0, window_bounds = array<i64: 24, 76>}, {pipeline_mode = #tpu.pipeline_mode<synchronous>, transform_indices = @transform_1, window_bounds = array<i64: 76, 512>}, {pipeline_mode = #tpu.pipeline_mode<synchronous>, transform_indices = @transform_2, window_bounds = array<i64: 1, 512>}, {pipeline_mode = #tpu.pipeline_mode<synchronous>, transform_indices = @transform_3, window_bounds = array<i64: 512, 128>}, {pipeline_mode = #tpu.pipeline_mode<synchronous>, transform_indices = @transform_4, window_bounds = array<i64: 1, 128>}, {transform_indices = @transform_5, window_bounds = array<i64: 24, 128>}]} {
    %c0 = arith.constant 0 : index
    %c0_0 = arith.constant 0 : index
    %0 = vector.load %arg2[%c0, %c0_0] : memref<76x512xf32, #tpu.memory_space<vmem>>, vector<76x512xf32>
    %c0_1 = arith.constant 0 : index
    %c0_2 = arith.constant 0 : index
    %1 = vector.load %arg4[%c0_1, %c0_2] : memref<512x128xf32, #tpu.memory_space<vmem>>, vector<512x128xf32>
    %c0_3 = arith.constant 0 : index
    %c0_4 = arith.constant 0 : index
    %2 = vector.load %arg1[%c0_3, %c0_4] : memref<24x76xf32, #tpu.memory_space<vmem>>, vector<24x76xf32>
    %cst = arith.constant dense<0.000000e+00> : vector<24x512xf32>
    %3 = tpu.matmul %2, %0, %cst {dimension_numbers = #tpu.dot_dimension_numbers<[1], [0], [0], [1], [0, 0, 1, 1], [], []>} : vector<24x76xf32>, vector<76x512xf32>, vector<24x512xf32> -> vector<24x512xf32>
    %c0_5 = arith.constant 0 : index
    %c0_6 = arith.constant 0 : index
    %4 = vector.load %arg3[%c0_5, %c0_6] : memref<1x512xf32, #tpu.memory_space<vmem>>, vector<1x512xf32>
    %5 = vector.broadcast %4 : vector<1x512xf32> to vector<24x512xf32>
    %6 = arith.addf %3, %5 : vector<24x512xf32>
    %cst_7 = arith.constant 0.000000e+00 : f32
    %7 = vector.broadcast %cst_7 : f32 to vector<24x512xf32>
    %8 = arith.maximumf %6, %7 : vector<24x512xf32>
    %cst_8 = arith.constant dense<0.000000e+00> : vector<24x128xf32>
    %9 = tpu.matmul %8, %1, %cst_8 {dimension_numbers = #tpu.dot_dimension_numbers<[1], [0], [0], [1], [0, 0, 1, 1], [], []>} : vector<24x512xf32>, vector<512x128xf32>, vector<24x128xf32> -> vector<24x128xf32>
    %c0_9 = arith.constant 0 : index
    %c0_10 = arith.constant 0 : index
    %10 = vector.load %arg5[%c0_9, %c0_10] : memref<1x128xf32, #tpu.memory_space<vmem>>, vector<1x128xf32>
    %11 = vector.broadcast %10 : vector<1x128xf32> to vector<24x128xf32>
    %12 = arith.addf %9, %11 : vector<24x128xf32>
    %c0_11 = arith.constant 0 : index
    %c0_12 = arith.constant 0 : index
    %13 = vector.load %arg6[%c0_11, %c0_12] : memref<24x128xf32, #tpu.memory_space<vmem>>, vector<24x128xf32>
    tpu.vector_store %arg6[%c0_11, %c0_12], %12 {strides = array<i32>} : memref<24x128xf32, #tpu.memory_space<vmem>>, vector<24x128xf32>,
    return
  }
  func.func @transform_0(%arg0: i32) -> (i32, i32) {
    %c0_i32 = arith.constant 0 : i32
    %c0_i32_0 = arith.constant 0 : i32
    return %arg0, %c0_i32 : i32, i32
  }
  func.func @transform_1(%arg0: i32) -> (i32, i32) {
    %c0_i32 = arith.constant 0 : i32
    %c0_i32_0 = arith.constant 0 : i32
    %c0_i32_1 = arith.constant 0 : i32
    return %c0_i32, %c0_i32_0 : i32, i32
  }
  func.func @transform_2(%arg0: i32) -> (i32, i32) {
    %c0_i32 = arith.constant 0 : i32
    %c0_i32_0 = arith.constant 0 : i32
    %c0_i32_1 = arith.constant 0 : i32
    return %c0_i32, %c0_i32_0 : i32, i32
  }
  func.func @transform_3(%arg0: i32) -> (i32, i32) {
    %c0_i32 = arith.constant 0 : i32
    %c0_i32_0 = arith.constant 0 : i32
    %c0_i32_1 = arith.constant 0 : i32
    return %c0_i32, %c0_i32_0 : i32, i32
  }
  func.func @transform_4(%arg0: i32) -> (i32, i32) {
    %c0_i32 = arith.constant 0 : i32
    %c0_i32_0 = arith.constant 0 : i32
    %c0_i32_1 = arith.constant 0 : i32
    return %c0_i32, %c0_i32_0 : i32, i32
  }
  func.func @transform_5(%arg0: i32) -> (i32, i32) {
    %c0_i32 = arith.constant 0 : i32
    %c0_i32_0 = arith.constant 0 : i32
    return %arg0, %c0_i32 : i32, i32
  }
}

</mosaic_0001>

<bundles_post_ra>
// kernel: tpu_custom_call.1
= control target key start
LH: loop header
LB: loop body
LE: loop exit
PB: predicated region body
PF: predicated region fallthrough
CT: control target
= control target key end

     0   :  { %10 = vsyncpa [#allocation3], 0  ;;  %s1679_s0 = inlined_call_operand.hbm [shape: f32[37,76], index: 0, kind: input, shape index: {}]   ;;  %s1680_s1 = inlined_call_operand.hbm [shape: f32[76,512], index: 1, kind: input, shape index: {}]   ;;  %s1681_s2 = inlined_call_operand.vmem [shape: f32[1,512], index: 2, kind: input, shape index: {}]   ;;  %s1682_s3 = inlined_call_operand.hbm [shape: f32[512,128], index: 3, kind: input, shape index: {}]   ;;  %s1683_s4 = inlined_call_operand.vmem [shape: f32[1,128], index: 4, kind: input, shape index: {}]   ;;  %s1684_s5 = inlined_call_operand.hbm [shape: f32[37,128], index: 5, kind: output, shape index: {}]  }
   0x1   :  { %12 = vsyncpa [#allocation3 + $0x1], 0 }
   0x2   :  { %13 = vsyncpa [#allocation6], 0 }
   0x3   :  { %14 = vsyncpa [#allocation4], 0 }
   0x4   :  { %16 = vsyncpa [#allocation4 + $0x1], 0  ;;  %s1395_s18 = smov 0   ;;  %s1397_s19 = smov 0  }
   0x5   :  { %s1399_s20 = smov 0   ;;  %s1401_s21 = smov 0  }
   0x6 LB: > { %s1416_s22 = sadd.s32 4294967295, %s1349_s21   ;;  %s900_s23 = sadd.s32 4294967294, %s1349_s21   ;;  %s1349_s21 = sphi %s1401_s21, %s1708_s21   ;;  %s1345_s20 = sphi %s1399_s20, %s1707_s20   ;;  %s1341_s19 = sphi %s1397_s19, %s1706_s19   ;;  %s1337_s18 = sphi %s1395_s18, %s1705_s18  }
   0x7   : > { %s1420_s24 = sadd.s32 1, %s1349_s21   ;;  %s29_s25 = sadd.s32 1, %s1345_s20 }
   0x8   : > { %s26_s26 = ssub.s32 %s1349_s21, %s1420_s24  ;;  %p36_p0 = scmp.ne.s32.totalorder %s1345_s20, %s1341_s19 }
   0x9   : > { %p27_p1 = scmp.eq.s32.totalorder %s26_s26, 0  ;;  %p37_p2 = scmp.eq.s32.totalorder %s1349_s21, 0 }
   0xa   : > { %p42_p3 = scmp.ne.s32.totalorder %s1341_s19, %s1337_s18  ;;  %p1685_p4 = scmp.eq.s32.totalorder %s1416_s22, 0 }
   0xb   : > { %s1432_s27 = scalar_select %p27_p1, %s1345_s20, %s29_s25  }
   0xc   : > { %p1434_p5 = por %p37_p2, %p36_p0  ;;  %p1440_p6 = por %p1685_p4, %p42_p3 }
   0xd   : > { %1688 = sst [smem:[#allocation12_spill]] %s1432_s27  ;;  %p150_p7 = scmp.eq.s32.totalorder %s1416_s22, 1 }
   0xe   : > { %s1689_s28 = scalar_select %p1434_p5, 1, 0 }
   0xf   : > { %s1690_s29 = scalar_select %p1440_p6, 1, 0 }
  0x10   : > { %p156_p8 = scmp.eq.s32.totalorder %s900_s23, 1  ;;  %p901_p9 = scmp.ge.s32.totalorder %s1349_s21, 1 }
  0x11   : > { %p163_p10 = scmp.lt.s32.totalorder %s1349_s21, 3  ;;  %p1447_p11 = por %p150_p7, %p36_p0 }
  0x12   : > { %p1451_p12 = por %p156_p8, %p42_p3  ;;  %s1351_s8 = smov [#allocation5]  }
  0x13   : > { %s1691_s30 = scalar_select %p1447_p11, 1, 0 }
  0x14   : > { %s1692_s6 = scalar_select %p1451_p12, 1, 0 }
  0x15   : > { %p1455_p13 = pnand %p901_p9, %p163_p10  ;;  %s175_s9 = sshll.u32 %s1351_s8, 4  ;;  %s176_s9 = int_to_ptr.vmem [resolvable:$true] %s175_s9 }
  0x16   : > { %s1352_s11 = smov [#allocation7]   ;;  %s1195_s15 = scalar_lea.hbm %s1680_s1, 5120 }
  0x17   : > { %s1693_s7 = scalar_select %p1455_p13, 1, 0 }
  0x18   : > { %p1135_p1 = pneg %p1455_p13  ;;  %s191_s12 = sshll.u32 %s1352_s11, 4  ;;  %s1467_s12 = int_to_ptr.vmem [resolvable:$true] %s191_s12 }
  0x19   : > { %p1196_p0 = scmp.ne.s32.totalorder %s1680_s1, %s1195_s15  ;;  %p1202_p9 = scmp.lt.u32.totalorder %s1195_s15, %s1680_s1 }
  0x1a   : > { %p1463_p2 = pnand %p1135_p1, %p1685_p4 }
  0x1c   : > { %p1197_p3 = pneg %p1463_p2 }
  0x1e   : > { %p1198_p7 = pnand %p1197_p3, %p1196_p0 }
  0x20   : > { %p1199_p8 = pneg %p1198_p7 }
  0x22   : > { %p1204_p10 = pnand %p1202_p9, %p1199_p8 }
  0x24   : > { %1207 = shalt.err (!%p1204_p10)
}
  0x25   : > { %s1208_s26 = scalar_lea.vmem %s176_s9, 5120  ;;  %p1216_p11 = scmp.lt.s32.totalorder %s176_s9, %s176_s9 }
  0x26   : > { %p1209_p1 = scmp.ne.s32.totalorder %s176_s9, %s1208_s26  ;;  %p1217_p6 = scmp.lt.s32.totalorder %s1208_s26, %s1208_s26 }
  0x28   : > { %p1211_p4 = pnand %p1209_p1, %p1197_p3  ;;  %p1218_p13 = por %p1217_p6, %p1216_p11 }
  0x2a   : > { %p1212_p12 = pneg %p1211_p4 }
  0x2c   : > { %p1219_p5 = pnand %p1218_p13, %p1212_p12 }
  0x2e   : > { %1222 = shalt.err (!%p1219_p5)
}
  0x2f   : > { %s1353_s8 = smov 512   ;;  %s1354_s11 = smov 32  }
  0x30   : > { %1138 = dma.hbm_to_vmem [thread:$0]  (!%p1463_p2), %s1680_s1, 5120, %s176_s9, [#allocation6], %s1353_s8, %s1353_s8, %s1354_s11  }
  0x31   : > { %s1223_s17 = scalar_lea.hbm %s1682_s3, 8192 }
  0x32   : > { %p1224_p4 = scmp.ne.s32.totalorder %s1682_s3, %s1223_s17  ;;  %p1230_p11 = scmp.lt.u32.totalorder %s1223_s17, %s1682_s3 }
  0x34   : > { %p1226_p5 = pnand %p1224_p4, %p1197_p3 }
  0x36   : > { %p1227_p6 = pneg %p1226_p5 }
  0x38   : > { %p1232_p12 = pnand %p1230_p11, %p1227_p6 }
  0x3a   : > { %1235 = shalt.err (!%p1232_p12)
}
  0x3b   : > { %s1236_s9 = scalar_lea.vmem %s1467_s12, 8192  ;;  %p1244_p8 = scmp.lt.s32.totalorder %s1467_s12, %s1467_s12 }
  0x3c   : > { %p1237_p13 = scmp.ne.s32.totalorder %s1467_s12, %s1236_s9  ;;  %p1245_p9 = scmp.lt.s32.totalorder %s1236_s9, %s1236_s9 }
  0x3e   : > { %p1239_p0 = pnand %p1237_p13, %p1197_p3  ;;  %p1246_p10 = por %p1245_p9, %p1244_p8 }
  0x40   : > { %p1240_p7 = pneg %p1239_p0 }
  0x42   : > { %p1247_p1 = pnand %p1246_p10, %p1240_p7 }
  0x44   : > { %1250 = shalt.err (!%p1247_p1)
}
  0x45   : > { %s1355_s27 = smov 128   ;;  %s1356_s8 = smov 8  }
  0x46   : > { %1141 = dma.hbm_to_vmem [thread:$0]  (!%p1463_p2), %s1682_s3, 8192, %s1467_s12, [#allocation6], %s1355_s27, %s1355_s27, %s1356_s8  }
  0x47   : > { %p904_p4 = scmp.ge.s32.totalorder %s1349_s21, 2 }
  0x48   : > { %p1695_p3 = scmp.ne.s32.totalorder (!%p904_p4), %s1689_s28, 0 }
  0x49   : > { %204 = sbr.rel (%p904_p4) target bundleno = 115 (0x73), region = 32 }
  0x50   : > { %207 = sbr.rel (!%p1695_p3) target bundleno = 115 (0x73), region = 36  ;;  %s208_s14 = sand.u32 (%p1695_p3), 1, %s1345_s20  }
  0x51   : > { %s213_s15 = smul.u32 (%p1695_p3), 3, %s1349_s21  ;;  %s1526_s23 = scalar_lea.sflag (%p1695_p3), [#allocation3], %s208_s14 }
  0x52   : > { %s1123_s16 = smul.u32 (%p1695_p3), 24, %s208_s14 }
  0x53   : > { %s214_s17 = ssub.s32 (%p1695_p3), 5, %s213_s15 }
  0x54   : > { %p215_p5 = scmp.lt.s32.totalorder (%p1695_p3), %s214_s17, 3  ;;  %s212_s25 = scalar_lea.vmem (%p1695_p3), [#allocation2], %s1123_s16 }
  0x57   : > { %s1710_s17 = smov (!%p215_p5, %s214_s17), 3 }
  0x58   : > { %s1523_s10 = sshll.u32 %s1710_s17, 7 }
  0x59   : > { %s219_s12 = ssub.s32 384, %s1523_s10 }
  0x5a   : > { %220 = vsyncadd %s1526_s23, %s219_s12  ;;  %p906_p2 = scmp.ne.s32.totalorder %s1523_s10, 0  ;;  %s931_s28 = smul.u32 384, %s1349_s21 }
  0x5b   : > { %s225_s26 = sshll.u32 %s212_s25, 4  ;;  %s1255_s15 = scalar_lea.hbm %s1679_s0, 640  ;;  %s1536_s26 = int_to_ptr.vmem [resolvable:$true] %s225_s26 }
  0x5c   : > { %s1534_s8 = scalar_lea.hbm %s1679_s0, %s931_s28 }
  0x5d   : > { %s1251_s11 = scalar_lea.hbm %s1534_s8, %s1523_s10  ;;  %p1256_p13 = scmp.lt.u32.totalorder %s1534_s8, %s1679_s0 }
  0x5e   : > { %p1252_p6 = scmp.ne.s32.totalorder %s1534_s8, %s1251_s11  ;;  %p1257_p0 = scmp.lt.u32.totalorder %s1255_s15, %s1251_s11 }
  0x5f   : > { %p1259_p8 = scmp.lt.u32.totalorder %s1251_s11, %s1534_s8 }
  0x60   : > { %p1253_p11 = pnand %p1252_p6, %p906_p2  ;;  %p1258_p7 = por %p1257_p0, %p1256_p13 }
  0x62   : > { %p1254_p12 = pneg %p1253_p11  ;;  %p1260_p9 = por %p1259_p8, %p1258_p7 }
  0x64   : > { %p1261_p10 = pnand %p1260_p9, %p1254_p12 }
  0x66   : > { %1264 = shalt.err (!%p1261_p10)
}
  0x67   : > { %s1265_s12 = scalar_lea.vmem %s1536_s26, %s1523_s10  ;;  %s1357_s25 = smov [#allocation2]  }
  0x68   : > { %p1266_p1 = scmp.ne.s32.totalorder %s1536_s26, %s1265_s12  ;;  %s1269_s28 = sshll.u32 %s1357_s25, 4  ;;  %s1270_s28 = int_to_ptr.vmem [resolvable:$false] %s1269_s28 }
  0x69   : > { %s1271_s9 = scalar_lea.vmem %s1270_s28, 768  ;;  %p1272_p6 = scmp.lt.s32.totalorder %s1536_s26, %s1270_s28 }
  0x6a   : > { %p1267_p3 = pnand %p1266_p1, %p906_p2  ;;  %p1273_p11 = scmp.lt.s32.totalorder %s1271_s9, %s1265_s12 }
  0x6c   : > { %p1268_p5 = pneg %p1267_p3  ;;  %p1274_p13 = por %p1273_p11, %p1272_p6 }
  0x6e   : > { %p1275_p0 = pnand %p1274_p13, %p1268_p5 }
  0x70   : > { %1278 = shalt.err (!%p1275_p0)
}
  0x71   : > { %s1358_s27 = smov 128   ;;  %s1359_s11 = smov 8  }
  0x72   : > { %231 = dma.hbm_to_vmem [thread:$0]  (%p906_p2), %s1534_s8, %s1523_s10, %s1536_s26, %s1526_s23, %s1358_s27, %s1358_s27, %s1359_s11  }
  0x73 PF: > { %p1696_p12 = scmp.ne.s32.totalorder %s1693_s7, 0 }
  0x74   : > { %s1566_s13 = sand.u32 (!%p1696_p12), 1, %s1341_s19   ;;  %p1697_p7 = scmp.ne.s32.totalorder (!%p1696_p12), %s1690_s29, 0 }
  0x75   : > { %237 = sbr.rel (%p1696_p12) target bundleno = 626 (0x272), region = 40  ;;  %s240_s15 = scalar_lea.sflag (!%p1696_p12), [#allocation3], %s1566_s13 }
  0x76   : > { %s1124_s14 = smul.u32 (!%p1696_p12), 24, %s1566_s13 }
  0x78   : > { %s1572_s16 = scalar_lea.vmem (!%p1696_p12), [#allocation2], %s1124_s14 }
  0x7c   : > { %1324 = dma.done.wait (%p1697_p7), %s240_s15, 384  }
  0x7d   : > { %1326 = vsyncadd (%p1697_p7), %s240_s15, 4294966912  ;;  %p1698_p2 = scmp.eq.s32.totalorder %s1416_s22, 0 }
  0x7f   : > { %1328 = dma.done.wait (%p1698_p2), [#allocation6], 13312   ;;  %p1699_p8 = pmov %p1698_p2 }
  0x80   : > { %v1360_v0 = vmov 0.0   ;;  %v289_v1 = vld [vmem:[#allocation5 + $0x8] sm:$0xff]  ;;  %v291_v3 = vld [vmem:[#allocation5 + $0x18] sm:$0xff]  ;;  %v288_v6 = vld [vmem:[#allocation5] sm:$0xff]  ;;  %vm427_vm0 = vcmask 1043456   ;;  %vm1361_vm1 = vmmov 1  }
  0x81   : > { %1330 = vsyncadd (%p1699_p8), [#allocation6], 4294953984  ;;  %504 = vmatprep.mubr.f32.mxu0 %v1360_v0  ;;  %587 = vmatprep.mubr.f32.mxu1 %v1360_v0  ;;  %v293_v2 = vld [vmem:[#allocation5 + $0x28] sm:$0xff]  ;;  %v295_v5 = vld [vmem:[#allocation5 + $0x38] sm:$0xff]  ;;  %vm417_vm3 = vcmask 621568   ;;  %s277_s26 = scalar_lea.vmem [#allocation8], %s1124_s14 }
  0x82   : > { %v1015_v4 = vpack.c.bf16 %v293_v2, %v289_v1  ;;  %v292_v7 = vld [vmem:[#allocation5 + $0x20] sm:$0xff]  ;;  %v1037_v8 = vpack.c.bf16 %v295_v5, %v291_v3  ;;  %v290_v10 = vld [vmem:[#allocation5 + $0x10] sm:$0xff]  ;;  %v297_v12 = vld [vmem:[#allocation5 + $0x48] sm:$0xff]  ;;  %s789_s8 = scalar_lea.sflag [#allocation4], %s1566_s13  ;;  %p1702_p9 = scmp.ne.s32.totalorder %s1691_s30, 0 }
  0x83   : > { %v1017_v9 = vpack.c.bf16 %v292_v7, %v288_v6  ;;  %v294_v11 = vld [vmem:[#allocation5 + $0x30] sm:$0xff]  ;;  %v301_v14 = vld [vmem:[#allocation5 + $0x68] sm:$0xff]  ;;  %v299_v15 = vld [vmem:[#allocation5 + $0x58] sm:$0xff]  ;;  %s796_s17 = smul.u32 (%p1702_p9), 3, %s1416_s22 }
  0x84   : > { %1016 = vmatprep.subr.bf16.mxu0 %v1015_v4  ;;  %v1039_v13 = vpack.c.bf16 %v294_v11, %v290_v10  ;;  %v303_v16 = vld [vmem:[#allocation5 + $0x78] sm:$0xff]  ;;  %1038 = vmatprep.subr.bf16.mxu1 %v1037_v8  ;;  %v1019_v17 = vpack.c.bf16 %v301_v14, %v297_v12  ;;  %v296_v19 = vld [vmem:[#allocation5 + $0x40] sm:$0xff]  ;;  %v298_v21 = vld [vmem:[#allocation5 + $0x50] sm:$0xff] }
  0x85   : > { %1018 = vmatpush1.bf16.msra.mxu0 %v1017_v9  ;;  %v1041_v18 = vpack.c.bf16 %v303_v16, %v299_v15  ;;  %v300_v20 = vld [vmem:[#allocation5 + $0x60] sm:$0xff]  ;;  %v302_v23 = vld [vmem:[#allocation5 + $0x70] sm:$0xff]  ;;  %v305_v24 = vld [vmem:[#allocation5 + $0x88] sm:$0xff]  ;;  %s797_s12 = ssub.s32 (%p1702_p9), 5, %s796_s17 }
  0x86   : > { %1040 = vmatpush1.bf16.msra.mxu1 %v1039_v13  ;;  %v1021_v22 = vpack.c.bf16 %v300_v20, %v296_v19  ;;  %v309_v25 = vld [vmem:[#allocation5 + $0xa8] sm:$0xff]  ;;  %1020 = vmatprep.subr.bf16.mxu0 %v1019_v17  ;;  %v1043_v26 = vpack.c.bf16 %v302_v23, %v298_v21  ;;  %v307_v28 = vld [vmem:[#allocation5 + $0x98] sm:$0xff]  ;;  %v304_v30 = vld [vmem:[#allocation5 + $0x80] sm:$0xff]  ;;  %p798_p10 = scmp.lt.s32.totalorder (%p1702_p9), %s797_s12, 3 }
  0x87   : > { %1042 = vmatprep.subr.bf16.mxu1 %v1041_v18  ;;  %v1023_v27 = vpack.c.bf16 %v309_v25, %v305_v24  ;;  %v311_v29 = vld [vmem:[#allocation5 + $0xb8] sm:$0xff]  ;;  %v308_v32 = vld [vmem:[#allocation5 + $0xa0] sm:$0xff]  ;;  %v306_v33 = vld [vmem:[#allocation5 + $0x90] sm:$0xff] }
  0x88   : > { %v1045_v31 = vpack.c.bf16 %v311_v29, %v307_v28  ;;  %v310_v34 = vld [vmem:[#allocation5 + $0xb0] sm:$0xff]  ;;  %v1025_v35 = vpack.c.bf16 %v308_v32, %v304_v30  ;;  %v313_v36 = vld [vmem:[#allocation5 + $0xc8] sm:$0xff]  ;;  %v315_v38 = vld [vmem:[#allocation5 + $0xd8] sm:$0xff] }
  0x89   : > { %1022 = vmatpush1.bf16.msra.mxu0 %v1021_v22  ;;  %v317_v37 = vld [vmem:[#allocation5 + $0xe8] sm:$0xff]  ;;  %v1047_v39 = vpack.c.bf16 %v310_v34, %v306_v33  ;;  %v319_v41 = vld [vmem:[#allocation5 + $0xf8] sm:$0xff]  ;;  %v312_v42 = vld [vmem:[#allocation5 + $0xc0] sm:$0xff] }
  0x8a   : > { %1044 = vmatpush1.bf16.msra.mxu1 %v1043_v26  ;;  %1024 = vmatprep.subr.bf16.mxu0 %v1023_v27  ;;  %v1027_v40 = vpack.c.bf16 %v317_v37, %v313_v36  ;;  %v316_v43 = vld [vmem:[#allocation5 + $0xe0] sm:$0xff]  ;;  %v1049_v44 = vpack.c.bf16 %v319_v41, %v315_v38  ;;  %v314_v45 = vld [vmem:[#allocation5 + $0xd0] sm:$0xff]  ;;  %v321_v47 = vld [vmem:[#allocation5 + $0x108] sm:$0xff] }
  0x8b   : > { %1046 = vmatprep.subr.bf16.mxu1 %v1045_v31  ;;  %v318_v46 = vld [vmem:[#allocation5 + $0xf0] sm:$0xff]  ;;  %v325_v48 = vld [vmem:[#allocation5 + $0x128] sm:$0xf]  ;;  %v323_v49 = vld [vmem:[#allocation5 + $0x118] sm:$0xff]  ;;  %v1029_v51 = vpack.c.bf16 %v316_v43, %v312_v42 }
  0x8c   : > { %v327_v50 = vld [vmem:[#allocation5 + $0x138] sm:$0xf]  ;;  %vm1584_vm2 = vmpackc.low %vm427_vm0, %vm1361_vm1  ;;  %v1051_v53 = vpack.c.bf16 %v318_v46, %v314_v45  ;;  %v1031_v54 = vpack.c.bf16 %v325_v48, %v321_v47  ;;  %v320_v55 = vld [vmem:[#allocation5 + $0x100] sm:$0xff] }
  0x8d   : > { %1026 = vmatpush1.bf16.msra.mxu0 %v1025_v35  ;;  %v324_v56 = vld [vmem:[#allocation5 + $0x120] sm:$0xf]  ;;  %v322_v57 = vld [vmem:[#allocation5 + $0x110] sm:$0xff]  ;;  %v1053_v58 = vpack.c.bf16 %v327_v50, %v323_v49  ;;  %v345_v61 = vld [vmem:[#allocation7 + $0x88] sm:$0xff] }
  0x8e   : > { %1048 = vmatpush1.bf16.msra.mxu1 %v1047_v39  ;;  %1028 = vmatprep.subr.bf16.mxu0 %v1027_v40  ;;  %v326_v59 = vld [vmem:[#allocation5 + $0x130] sm:$0xf]  ;;  %v344_v60 = vld [vmem:[#allocation7 + $0x80] sm:$0xff]  ;;  %v377_v63 = vld [vmem:[#allocation7 + $0x188] sm:$0xff]  ;;  %v1034_v1 = vpack.c.bf16 %v324_v56, %v320_v55 }
  0x8f   : > { %1050 = vmatprep.subr.bf16.mxu1 %v1049_v44  ;;  %v376_v62 = vld [vmem:[#allocation7 + $0x180] sm:$0xff]  ;;  %v1056_v2 = vpack.c.bf16 %v326_v59, %v322_v57  ;;  %v1059_v3 = vpack.c.bf16 %v345_v61, %v344_v60  ;;  %v329_v6 = vld [vmem:[#allocation7 + $0x8] sm:$0xff]  ;;  %v346_v9 = vld [vmem:[#allocation7 + $0x90] sm:$0xff] }
  0x90   : > { %v1091_v4 = vpack.c.bf16 %v377_v63, %v376_v62  ;;  %v328_v5 = vld [vmem:[#allocation7] sm:$0xff]  ;;  %v361_v8 = vld [vmem:[#allocation7 + $0x108] sm:$0xff]  ;;  %v347_v10 = vld [vmem:[#allocation7 + $0x98] sm:$0xff] }
  0x91   : > { %1030 = vmatpush1.bf16.msra.mxu0 %v1029_v51  ;;  %v360_v7 = vld [vmem:[#allocation7 + $0x100] sm:$0xff]  ;;  %v392_v11 = vld [vmem:[%s1572_s16] sm:$0xff]  ;;  %v379_v13 = vld [vmem:[#allocation7 + $0x198] sm:$0xff]  ;;  %v1061_v14 = vpack.c.bf16 %v329_v6, %v328_v5  ;;  %v1063_v16 = vpack.c.bf16 %v347_v10, %v346_v9 }
  0x92   : > { %1052 = vmatpush1.bf16.msra.mxu1 %v1051_v53  ;;  %1033 = vmatprep.subr.msk.bf16.mxu0 %vm1584_vm2, %v1031_v54  ;;  %v378_v12 = vld [vmem:[#allocation7 + $0x190] sm:$0xff]  ;;  %v1093_v15 = vpack.c.bf16 %v361_v8, %v360_v7  ;;  %v331_v18 = vld [vmem:[#allocation7 + $0x18] sm:$0xff]  ;;  %v348_v22 = vld [vmem:[#allocation7 + $0xa0] sm:$0xff] }
  0x93   : > { %1055 = vmatprep.subr.msk.bf16.mxu1 %vm1584_vm2, %v1053_v58  ;;  %v330_v17 = vld [vmem:[#allocation7 + $0x10] sm:$0xff]  ;;  %v1095_v20 = vpack.c.bf16 %v379_v13, %v378_v12  ;;  %v363_v21 = vld [vmem:[#allocation7 + $0x118] sm:$0xff]  ;;  %v349_v23 = vld [vmem:[#allocation7 + $0xa8] sm:$0xff] }
  0x94   : > { %v362_v19 = vld [vmem:[#allocation7 + $0x110] sm:$0xff]  ;;  %v380_v25 = vld [vmem:[#allocation7 + $0x1a0] sm:$0xff]  ;;  %v381_v26 = vld [vmem:[#allocation7 + $0x1a8] sm:$0xff]  ;;  %v1065_v27 = vpack.c.bf16 %v331_v18, %v330_v17  ;;  %v1067_v29 = vpack.c.bf16 %v349_v23, %v348_v22 }
  0x95   : > { %1036 = vmatpush1.bf16.msk.msra.mxu0 %vm1584_vm2, %v1034_v1  ;;  %v393_v24 = vld [vmem:[%s1572_s16 + $0x8] sm:$0xff]  ;;  %v1097_v28 = vpack.c.bf16 %v363_v21, %v362_v19  ;;  %v332_v30 = vld [vmem:[#allocation7 + $0x20] sm:$0xff]  ;;  %v333_v31 = vld [vmem:[#allocation7 + $0x28] sm:$0xff]  ;;  %v1099_v33 = vpack.c.bf16 %v381_v26, %v380_v25 }
  0x96   : > { %1058 = vmatpush1.bf16.msk.msra.mxu1 %vm1584_vm2, %v1056_v2  ;;  %1060 = vmatprep.subr.bf16.mxu0 %v1059_v3  ;;  %v364_v32 = vld [vmem:[#allocation7 + $0x120] sm:$0xff]  ;;  %v365_v34 = vld [vmem:[#allocation7 + $0x128] sm:$0xff]  ;;  %v350_v35 = vld [vmem:[#allocation7 + $0xb0] sm:$0xff]  ;;  %v1069_v40 = vpack.c.bf16 %v333_v31, %v332_v30 }
  0x97   : > { %1092 = vmatprep.subr.bf16.mxu1 %v1091_v4  ;;  %v351_v36 = vld [vmem:[#allocation7 + $0xb8] sm:$0xff]  ;;  %v382_v38 = vld [vmem:[#allocation7 + $0x1b0] sm:$0xff]  ;;  %v1101_v41 = vpack.c.bf16 %v365_v34, %v364_v32  ;;  %v352_v48 = vld [vmem:[#allocation7 + $0xc0] sm:$0xff]  ;;  %v397_v34 = vlaneseq }
  0x98   : > { %915 = vmatmul.mubr.msk.f32.vlgmr.msra.gmra.mrb[0].mxu0 %vm417_vm3, %v392_v11  ;;  %v394_v37 = vld [vmem:[%s1572_s16 + $0x10] sm:$0xff]  ;;  %v1071_v42 = vpack.c.bf16 %v351_v36, %v350_v35  ;;  %v334_v43 = vld [vmem:[#allocation7 + $0x30] sm:$0xff]  ;;  %v353_v49 = vld [vmem:[#allocation7 + $0xc8] sm:$0xff] }
  0x99   : > { %920 = vmatmul.mubr.msk.f32.vlgmr.msra.gmra.mrb[0].mxu1 %vm417_vm3, %v392_v11  ;;  %510 = vmatprep.mubr.f32.mxu0 %v1360_v0  ;;  %v383_v39 = vld [vmem:[#allocation7 + $0x1b8] sm:$0xff]  ;;  %v366_v45 = vld [vmem:[#allocation7 + $0x130] sm:$0xff]  ;;  %v384_v50 = vld [vmem:[#allocation7 + $0x1c0] sm:$0xff]  ;;  %v1075_v53 = vpack.c.bf16 %v353_v49, %v352_v48  ;;  %v398_v35 = vshrl.u32 %v397_v34, 7 }
  0x9a   : > { %593 = vmatprep.mubr.f32.mxu1 %v1360_v0  ;;  %1062 = vmatpush3.bf16.msra.mxu0 %v1061_v14  ;;  %v335_v44 = vld [vmem:[#allocation7 + $0x38] sm:$0xff]  ;;  %v1103_v46 = vpack.c.bf16 %v383_v39, %v382_v38  ;;  %v336_v54 = vld [vmem:[#allocation7 + $0x40] sm:$0xff]  ;;  %v337_v55 = vld [vmem:[#allocation7 + $0x48] sm:$0xff] }
  0x9b   : > { %1094 = vmatpush3.bf16.msra.mxu1 %v1093_v15  ;;  %1064 = vmatprep.subr.bf16.mxu0 %v1063_v16  ;;  %v367_v47 = vld [vmem:[#allocation7 + $0x138] sm:$0xff]  ;;  %v1073_v51 = vpack.c.bf16 %v335_v44, %v334_v43  ;;  %v368_v56 = vld [vmem:[#allocation7 + $0x140] sm:$0xff]  ;;  %v369_v58 = vld [vmem:[#allocation7 + $0x148] sm:$0xff]  ;;  %v1077_v63 = vpack.c.bf16 %v337_v55, %v336_v54  ;;  %v399_v36 = vsub.s32 0, %v398_v35  ;;  %v407_v38 = vsub.s32 2, %v398_v35 }
  0x9c   : > { %916 = vmatmul.mubr.msk.f32.gmra.mrb[2].mxu0 %vm417_vm3, %v393_v24  ;;  %1096 = vmatprep.subr.bf16.mxu1 %v1095_v20  ;;  %v1105_v52 = vpack.c.bf16 %v367_v47, %v366_v45  ;;  %v354_v59 = vld [vmem:[#allocation7 + $0xd0] sm:$0xff]  ;;  %v355_v60 = vld [vmem:[#allocation7 + $0xd8] sm:$0xff]  ;;  %v1109_v1 = vpack.c.bf16 %v369_v58, %v368_v56  ;;  %v356_v8 = vld [vmem:[#allocation7 + $0xe0] sm:$0xff]  ;;  %v403_v39 = vsub.s32 1, %v398_v35 }
  0x9d   : > { %921 = vmatmul.mubr.msk.f32.gmra.mrb[2].mxu1 %vm417_vm3, %v393_v24  ;;  %516 = vmatprep.mubr.f32.mxu0 %v1360_v0  ;;  %v386_v61 = vld [vmem:[#allocation7 + $0x1d0] sm:$0xff]  ;;  %v387_v62 = vld [vmem:[#allocation7 + $0x1d8] sm:$0xff]  ;;  %v1079_v2 = vpack.c.bf16 %v355_v60, %v354_v59  ;;  %v357_v9 = vld [vmem:[#allocation7 + $0xe8] sm:$0xff] }
  0x9e   : > { %599 = vmatprep.mubr.f32.mxu1 %v1360_v0  ;;  %1066 = vmatpush3.bf16.msra.mxu0 %v1065_v27  ;;  %v385_v0 = vld [vmem:[#allocation7 + $0x1c8] sm:$0xff]  ;;  %v338_v3 = vld [vmem:[#allocation7 + $0x50] sm:$0xff]  ;;  %v339_v4 = vld [vmem:[#allocation7 + $0x58] sm:$0xff]  ;;  %v1111_v6 = vpack.c.bf16 %v387_v62, %v386_v61  ;;  %v1083_v14 = vpack.c.bf16 %v357_v9, %v356_v8 }
  0x9f   : > { %1098 = vmatpush3.bf16.msra.mxu1 %v1097_v28  ;;  %1068 = vmatprep.subr.bf16.mxu0 %v1067_v29  ;;  %v1107_v57 = vpack.c.bf16 %v385_v0, %v384_v50  ;;  %v370_v5 = vld [vmem:[#allocation7 + $0x150] sm:$0xff]  ;;  %v371_v7 = vld [vmem:[#allocation7 + $0x158] sm:$0xff]  ;;  %v388_v10 = vld [vmem:[#allocation7 + $0x1e0] sm:$0xff]  ;;  %v1081_v12 = vpack.c.bf16 %v339_v4, %v338_v3 }
  0xa0   : > { %917 = vmatmul.mubr.msk.f32.gmra.mrb[4].mxu0 %vm417_vm3, %v394_v37  ;;  %1100 = vmatprep.subr.bf16.mxu1 %v1099_v33  ;;  %v389_v11 = vld [vmem:[#allocation7 + $0x1e8] sm:$0xff]  ;;  %v1113_v13 = vpack.c.bf16 %v371_v7, %v370_v5  ;;  %v340_v16 = vld [vmem:[#allocation7 + $0x60] sm:$0xff]  ;;  %v358_v22 = vld [vmem:[#allocation7 + $0xf0] sm:$0xff] }
  0xa1   : > { %922 = vmatmul.mubr.msk.f32.gmra.mrb[4].mxu1 %vm417_vm3, %v394_v37  ;;  %v1115_v15 = vpack.c.bf16 %v389_v11, %v388_v10  ;;  %v341_v17 = vld [vmem:[#allocation7 + $0x68] sm:$0xff]  ;;  %v372_v18 = vld [vmem:[#allocation7 + $0x160] sm:$0xff]  ;;  %v359_v23 = vld [vmem:[#allocation7 + $0xf8] sm:$0xff] }
  0xa2   : > { %1070 = vmatpush3.bf16.msra.mxu0 %v1069_v40  ;;  %v1085_v19 = vpack.c.bf16 %v341_v17, %v340_v16  ;;  %v373_v20 = vld [vmem:[#allocation7 + $0x168] sm:$0xff]  ;;  %v390_v24 = vld [vmem:[#allocation7 + $0x1f0] sm:$0xff]  ;;  %v1087_v25 = vpack.c.bf16 %v359_v23, %v358_v22  ;;  %v391_v26 = vld [vmem:[#allocation7 + $0x1f8] sm:$0xff]  ;;  %v411_v40 = vsub.s32 3, %v398_v35 }
  0xa3   : > { %1102 = vmatpush3.bf16.msra.mxu1 %v1101_v41  ;;  %1072 = vmatprep.subr.bf16.mxu0 %v1071_v42  ;;  %v1117_v21 = vpack.c.bf16 %v373_v20, %v372_v18  ;;  %v342_v27 = vld [vmem:[#allocation7 + $0x70] sm:$0xff]  ;;  %v343_v28 = vld [vmem:[#allocation7 + $0x78] sm:$0xff]  ;;  %v1119_v29 = vpack.c.bf16 %v391_v26, %v390_v24 }
  0xa4   : > { %1104 = vmatprep.subr.bf16.mxu1 %v1103_v46  ;;  %v1089_v30 = vpack.c.bf16 %v343_v28, %v342_v27  ;;  %v374_v31 = vld [vmem:[#allocation7 + $0x170] sm:$0xff]  ;;  %v375_v32 = vld [vmem:[#allocation7 + $0x178] sm:$0xff] }
  0xa5   : > { %v1121_v33 = vpack.c.bf16 %v375_v32, %v374_v31  ;;  %v395_v37 = vld [vmem:[%s1681_s2] sm:$0xf] }
  0xa6   : > { %1074 = vmatpush3.bf16.msra.mxu0 %v1073_v51  ;;  %v400_v41 = vrot.slane %v395_v37, %v399_v36  ;;  %v408_v42 = vrot.slane %v395_v37, %v407_v38  ;;  %v404_v43 = vrot.slane %v395_v37, %v403_v39  ;;  %v412_v44 = vrot.slane %v395_v37, %v411_v40 }
  0xa7   : > { %1106 = vmatpush3.bf16.msra.mxu1 %v1105_v52  ;;  %1076 = vmatprep.subr.bf16.mxu0 %v1075_v53 }
  0xa8   : > { %1108 = vmatprep.subr.bf16.mxu1 %v1107_v57 }
  0xaa   : > { %1078 = vmatpush3.bf16.msra.mxu0 %v1077_v63 }
  0xab   : > { %1110 = vmatpush3.bf16.msra.mxu1 %v1109_v1  ;;  %1080 = vmatprep.subr.bf16.mxu0 %v1079_v2 }
  0xac   : > { %1112 = vmatprep.subr.bf16.mxu1 %v1111_v6 }
  0xae   : > { %1082 = vmatpush3.bf16.msra.mxu0 %v1081_v12 }
  0xaf   : > { %1114 = vmatpush3.bf16.msra.mxu1 %v1113_v13  ;;  %1084 = vmatprep.subr.bf16.mxu0 %v1083_v14 }
  0xb0   : > { %1116 = vmatprep.subr.bf16.mxu1 %v1115_v15 }
  0xb2   : > { %1086 = vmatpush3.bf16.msra.mxu0 %v1085_v19  ;;  %v923_v19 = vld [vmem:[%s1683_s4] ss:$0 sm:$0xff] }
  0xb3   : > { %1118 = vmatpush3.bf16.msra.mxu1 %v1117_v21  ;;  %1088 = vmatprep.subr.bf16.mxu0 %v1087_v25 }
  0xb4   : > { %1120 = vmatprep.subr.bf16.mxu1 %v1119_v29 }
  0xb6   : > { %1090 = vmatpush3.bf16.msra.mxu0 %v1089_v30 }
  0xb7   : > { %1122 = vmatpush3.bf16.msra.mxu1 %v1121_v33 }
 0x16b   : > { %v506_v45 = vpop.f32.mrb[0].mxu0 }
 0x16c   : > { %v507_v46 = vadd.f32 %v506_v45, %v400_v41  ;;  %v589_v47 = vpop.f32.mrb[0].mxu1  ;;  %v508_v48 = vpop.f32.mrb[1].mxu0 }
 0x16d   : > { %v590_v49 = vadd.f32 %v589_v47, %v408_v42  ;;  %v509_v50 = vadd.f32 %v508_v48, %v404_v43  ;;  %v591_v0 = vpop.f32.mrb[1].mxu1 }
 0x16e   : > { %v592_v51 = vadd.f32 %v591_v0, %v412_v44  ;;  %v606_v55 = vmax.f32 %v507_v46, 0.0 }
 0x16f   : > { %v608_v52 = vmax.f32 %v590_v49, 0.0  ;;  %v607_v53 = vmax.f32 %v509_v50, 0.0  ;;  %v512_v54 = vpop.f32.mrb[2].mxu0 }
 0x170   : > { %v609_v56 = vmax.f32 %v592_v51, 0.0  ;;  %v513_v57 = vadd.f32 %v512_v54, %v400_v41  ;;  %v595_v58 = vpop.f32.mrb[2].mxu1  ;;  %v514_v59 = vpop.f32.mrb[3].mxu0 }
 0x171   : > { %v596_v60 = vadd.f32 %v595_v58, %v408_v42  ;;  %v515_v61 = vadd.f32 %v514_v59, %v404_v43  ;;  %v597_v62 = vpop.f32.mrb[3].mxu1  ;;  %689 = vmatprep.mubr.f32.mxu0 %v607_v53 }
 0x172   : > { %v598_v63 = vadd.f32 %v597_v62, %v412_v44  ;;  %769 = vmatprep.mubr.f32.mxu1 %v609_v56  ;;  %690 = vmatmul.mubr.f32.vlgmr.msra.gmra.mrb[6].mxu0 %v606_v55  ;;  %v610_v4 = vmax.f32 %v513_v57, 0.0 }
 0x173   : > { %v612_v1 = vmax.f32 %v596_v60, 0.0  ;;  %v611_v2 = vmax.f32 %v515_v61, 0.0  ;;  %770 = vmatmul.mubr.f32.vlgmr.msra.gmra.mrb[6].mxu1 %v608_v52  ;;  %v518_v3 = vpop.f32.mrb[4].mxu0 }
 0x174   : > { %v613_v5 = vmax.f32 %v598_v63, 0.0  ;;  %v519_v6 = vadd.f32 %v518_v3, %v400_v41  ;;  %v601_v7 = vpop.f32.mrb[4].mxu1  ;;  %v520_v8 = vpop.f32.mrb[5].mxu0 }
 0x175   : > { %v602_v9 = vadd.f32 %v601_v7, %v408_v42  ;;  %v521_v10 = vadd.f32 %v520_v8, %v404_v43  ;;  %v603_v11 = vpop.f32.mrb[5].mxu1  ;;  %694 = vmatprep.mubr.f32.mxu0 %v611_v2 }
 0x176   : > { %v604_v12 = vadd.f32 %v603_v11, %v412_v44  ;;  %774 = vmatprep.mubr.f32.mxu1 %v613_v5  ;;  %695 = vmatmul.mubr.f32.gmra.mrb[8].mxu0 %v610_v4  ;;  %v614_v15 = vmax.f32 %v519_v6, 0.0 }
 0x177   : > { %v616_v13 = vmax.f32 %v602_v9, 0.0  ;;  %v615_v14 = vmax.f32 %v521_v10, 0.0  ;;  %775 = vmatmul.mubr.f32.gmra.mrb[8].mxu1 %v612_v1 }
 0x178   : > { %v617_v16 = vmax.f32 %v604_v12, 0.0 }
 0x179   : > { %699 = vmatprep.mubr.f32.mxu0 %v615_v14 }
 0x17a   : > { %779 = vmatprep.mubr.f32.mxu1 %v617_v16  ;;  %700 = vmatmul.mubr.f32.gmra.mrb[10].mxu0 %v614_v15 }
 0x17b   : > { %780 = vmatmul.mubr.f32.gmra.mrb[10].mxu1 %v616_v13 }
 0x245   : > { %v965_v17 = vpop.f32.mrb[6].mxu0 }
 0x246   : > { %v1006_v18 = vpop.f32.mrb[6].mxu1  ;;  %v966_v20 = vpop.f32.mrb[7].mxu0 }
 0x247   : > { %v967_v21 = vadd.f32 %v966_v20, %v965_v17  ;;  %v1007_v22 = vpop.f32.mrb[7].mxu1 }
 0x248   : > { %v1008_v23 = vadd.f32 %v1007_v22, %v1006_v18 }
 0x249   : > { %v692_v24 = vadd.f32 %v967_v21, %v923_v19  ;;  %v968_v25 = vpop.f32.mrb[8].mxu0 }
 0x24a   : > { %v1009_v26 = vpop.f32.mrb[8].mxu1  ;;  %v969_v27 = vpop.f32.mrb[9].mxu0 }
 0x24b   : > { %v772_v28 = vadd.f32 %v1008_v23, %v692_v24  ;;  %v970_v29 = vadd.f32 %v969_v27, %v968_v25  ;;  %v1010_v30 = vpop.f32.mrb[9].mxu1 }
 0x24c   : > { %v1011_v31 = vadd.f32 %v1010_v30, %v1009_v26 }
 0x24d   : > { %785 = vst [vmem:[%s277_s26] sm:$0xff] %v772_v28  ;;  %v697_v32 = vadd.f32 %v970_v29, %v923_v19  ;;  %v971_v33 = vpop.f32.mrb[10].mxu0 }
 0x24e   : > { %v1012_v34 = vpop.f32.mrb[10].mxu1  ;;  %v972_v35 = vpop.f32.mrb[11].mxu0 }
 0x24f   : > { %v777_v36 = vadd.f32 %v1011_v31, %v697_v32  ;;  %v973_v37 = vadd.f32 %v972_v35, %v971_v33  ;;  %v1013_v38 = vpop.f32.mrb[11].mxu1  ;;  %795 = sbr.rel (!%p1702_p9) target bundleno = 626 (0x272), region = 56 }
 0x250   : > { %v1014_v39 = vadd.f32 %v1013_v38, %v1012_v34 }
 0x251   : > { %786 = vst [vmem:[%s277_s26 + $0x8] sm:$0xff] %v777_v36  ;;  %v702_v40 = vadd.f32 %v973_v37, %v923_v19 }
 0x253   : > { %v782_v41 = vadd.f32 %v1014_v39, %v702_v40 }
 0x255   : > { %787 = vst [vmem:[%s277_s26 + $0x10] sm:$0xff] %v782_v41 }
 0x256   : > { %s1712_s12 = smov (!%p798_p10, %s797_s12), 3 }
 0x257   : > { %s1621_s25 = sshll.u32 %s1712_s12, 7 }
 0x258   : > { %s802_s28 = ssub.s32 384, %s1621_s25 }
 0x259   : > { %803 = vsyncadd %s789_s8, %s802_s28  ;;  %p925_p1 = scmp.ne.s32.totalorder %s1621_s25, 0  ;;  %s932_s9 = smul.u32 384, %s1416_s22 }
 0x25a   : > { %s808_s30 = sshll.u32 %s277_s26, 4  ;;  %s1362_s16 = smov [#allocation8]   ;;  %s1633_s30 = int_to_ptr.vmem [resolvable:$true] %s808_s30 }
 0x25b   : > { %s1631_s14 = scalar_lea.hbm %s1684_s5, %s932_s9  ;;  %s1279_s15 = scalar_lea.vmem %s1633_s30, %s1621_s25 }
 0x25c   : > { %p1280_p3 = scmp.ne.s32.totalorder %s1633_s30, %s1279_s15  ;;  %s1283_s29 = sshll.u32 %s1362_s16, 4  ;;  %s1284_s29 = int_to_ptr.vmem [resolvable:$false] %s1283_s29 }
 0x25d   : > { %s1285_s22 = scalar_lea.vmem %s1284_s29, 768  ;;  %p1286_p11 = scmp.lt.s32.totalorder %s1633_s30, %s1284_s29 }
 0x25e   : > { %p1281_p5 = pnand %p1280_p3, %p925_p1  ;;  %p1287_p13 = scmp.lt.s32.totalorder %s1285_s22, %s1279_s15 }
 0x260   : > { %p1282_p6 = pneg %p1281_p5  ;;  %p1288_p0 = por %p1287_p13, %p1286_p11 }
 0x262   : > { %p1289_p12 = pnand %p1288_p0, %p1282_p6 }
 0x264   : > { %1292 = shalt.err (!%p1289_p12)
}
 0x265   : > { %s1293_s7 = scalar_lea.hbm %s1631_s14, %s1621_s25  ;;  %s1297_s26 = scalar_lea.hbm %s1684_s5, 640 }
 0x266   : > { %p1294_p7 = scmp.ne.s32.totalorder %s1631_s14, %s1293_s7  ;;  %p1298_p9 = scmp.lt.u32.totalorder %s1631_s14, %s1684_s5 }
 0x267   : > { %p1299_p10 = scmp.lt.u32.totalorder %s1297_s26, %s1293_s7  ;;  %p1301_p5 = scmp.lt.u32.totalorder %s1293_s7, %s1631_s14 }
 0x268   : > { %p1295_p2 = pnand %p1294_p7, %p925_p1 }
 0x269   : > { %p1300_p3 = por %p1299_p10, %p1298_p9 }
 0x26a   : > { %p1296_p8 = pneg %p1295_p2 }
 0x26b   : > { %p1302_p6 = por %p1301_p5, %p1300_p3 }
 0x26d   : > { %p1303_p11 = pnand %p1302_p6, %p1296_p8 }
 0x26f   : > { %1306 = shalt.err (!%p1303_p11)
}
 0x270   : > { %s1363_s28 = smov 128   ;;  %s1364_s9 = smov 8  }
 0x271   : > { %814 = dma.vmem_to_hbm [thread:$0]  (%p925_p1), %s1633_s30, %s1621_s25, %s1631_s14, %s789_s8, %s1363_s28, %s1363_s28, %s1364_s9  }
 0x272 PF: > { %s823_s27 = sand.u32 1, %s1337_s18   ;;  %p1703_p13 = scmp.ne.s32.totalorder %s1692_s6, 0 }
 0x273   : > { %s824_s11 = scalar_lea.sflag [#allocation4], %s823_s27 }
 0x274   : > { %p1143_p0 = pnand %p904_p4, %p1703_p13 }
 0x276   : > { %1332 = dma.done.wait (!%p1143_p0), %s824_s11, 384  }
 0x277   : > { %1334 = vsyncadd (!%p1143_p0), %s824_s11, 4294966912  ;;  %s1704_s15 = sld [smem:[#allocation12_spill]]  ;;  %p19_p12 = scmp.ge.s32.totalorder %s1420_s24, 4  }
 0x278   : > { %s1705_s18 = smov %s1341_s19  ;;  %s1706_s19 = smov %s1345_s20 }
 0x279   : > { %s1708_s21 = smov %s1420_s24  ;;  %21 = sbr.rel (!%p19_p12) target bundleno = 6 (0x6), region = 93 }
 0x27d   : > { %s1707_s20 = smov %s1704_s15 }
 0x280   :  { %829 = vsyncpa [#allocation3], 1 }
 0x281   :  { %831 = vsyncpa [#allocation3 + $0x1], 1 }
 0x282   :  { %832 = vsyncpa [#allocation6], 1 }
 0x283   :  { %833 = vsyncpa [#allocation4], 1 }
 0x284   :  { %835 = vsyncpa [#allocation4 + $0x1], 1 }

</bundles_post_ra>
